<compile_context>
chip_gen: v7x
topology: tpu7x:2x2x1
jax: 0.10.0
libtpu: 0.0.40
codegen_flags: <defaults>
</compile_context>

<pallas_src>
import jax
import jax.numpy as jnp
from jax.experimental import pallas as pl
from jax.experimental.pallas import tpu as pltpu


def _make_kernel(HO, WO, W, KH, PH):
    SL = (PH + 1) // 2      # top zero-halo rows per row-phase plane
    SR = PH // 2            # bottom zero-halo rows per row-phase plane

    def kernel(b_ref, y_ref, x_ref, out_ref, scr_ref):
        # scr_ref: (2, SL + HO + SR, W) f32 — zero-row-padded even/odd row-phase planes of y.
        # Re-zero the halo strips every step (scratch persists across steps and is per-core).
        if SL > 0:
            scr_ref[0, 0:SL, :] = jnp.zeros((SL, W), jnp.float32)
            scr_ref[1, 0:SL, :] = jnp.zeros((SL, W), jnp.float32)
        if SR > 0:
            scr_ref[0, SL + HO:SL + HO + SR, :] = jnp.zeros((SR, W), jnp.float32)
            scr_ref[1, SL + HO:SL + HO + SR, :] = jnp.zeros((SR, W), jnp.float32)

        # y_ref[0] is (HO, 2W): columns [0:W] are the even rows of y, [W:2W] the odd rows
        # (free reshape done in the wrapper).  Cast to f32 in-kernel; HBM stays native dtype.
        scr_ref[0, SL:SL + HO, :] = y_ref[0, :, 0:W].astype(jnp.float32)
        scr_ref[1, SL:SL + HO, :] = y_ref[0, :, W:2 * W].astype(jnp.float32)

        # Depthwise stride-2 "same" conv as KH small MXU matmuls:
        #   x_hat[i, j] = sum_dh  y_zp[2i + dh, :] @ B[dh, :, j]
        # where B[dh, c, j] = k[dh, c - 2j + PW] (banded; built once in the wrapper) absorbs the
        # column taps, the column zero-padding and the stride-2 column subsample.  The row
        # selection y_zp[2i + dh, :] is a unit-stride window of one row-phase plane.
        # Two accumulators break the serial accumulation chain.
        acc0 = jnp.zeros((HO, WO), jnp.float32)
        acc1 = jnp.zeros((HO, WO), jnp.float32)
        for dh in range(KH):
            q = (dh - PH) % 2       # which row-phase plane (even / odd rows of y)
            s = (dh - PH) // 2      # static row offset inside that plane
            rows = scr_ref[q, SL + s:SL + s + HO, :]                       # (HO, W)
            contrib = jnp.dot(rows, b_ref[dh], preferred_element_type=jnp.float32)
            if dh % 2 == 0:
                acc0 = acc0 + contrib
            else:
                acc1 = acc1 + contrib
        x_hat = acc0 + acc1

        # NOTE: the PyTorch fake-quant block (127.5*(x+1); round() result discarded; /127.5 - 1)
        # is the identity, so it is elided here.
        diff = jnp.abs(x_ref[0].astype(jnp.float32) - x_hat)
        out_ref[...] = jnp.full((1, 1, 1), jnp.sum(diff), dtype=jnp.float32)

    return kernel


@jax.jit
def downsample_loss(x, y, k):
    """Pallas implementation of DownsampleLoss.forward(x, y, k) -> scalar loss."""
    N, C, H, W = y.shape
    KH, KW = k.shape
    assert KH % 2 == 1 and KW % 2 == 1, "odd blur kernel assumed"
    PH, PW = KH // 2, KW // 2
    HO, WO = H // 2, W // 2
    assert x.shape == (N, C, HO, WO)

    # ---- Layout glue: free contiguous reshapes only (no pad, no polyphase copy, no up-cast) ----
    G = N * C
    #   y2[g, a, 0:W]  = y[g, 2a,   :]   (even rows)
    #   y2[g, a, W:2W] = y[g, 2a+1, :]   (odd rows)
    y2 = y.reshape(G, HO, 2 * W)
    x2 = x.reshape(G, HO, WO)

    # ---- Banded column matrix: B[dh, c, j] = k[dh, c - 2j + PW] if valid else 0 (f32, tiny) ----
    c_idx = jnp.arange(W)[:, None]
    j_idx = jnp.arange(WO)[None, :]
    dw = c_idx - 2 * j_idx + PW                       # (W, WO)
    valid = (dw >= 0) & (dw < KW)
    k32 = k.astype(jnp.float32)
    B = jnp.where(valid[None, :, :], k32[:, jnp.clip(dw, 0, KW - 1)], 0.0)  # (KH, W, WO)

    kernel = _make_kernel(HO, WO, W, KH, PH)

    partial = pl.pallas_call(
        kernel,
        out_shape=jax.ShapeDtypeStruct((G, 1, 1), jnp.float32),
        grid_spec=pltpu.PrefetchScalarGridSpec(
            num_scalar_prefetch=0,
            grid=(G,),                                            # one (sample, channel) plane / step
            in_specs=[
                pl.BlockSpec((KH, W, WO), lambda g: (0, 0, 0)),    # B: fetched once, VMEM-resident
                pl.BlockSpec((1, HO, 2 * W), lambda g: (g, 0, 0)),  # y plane, native dtype
                pl.BlockSpec((1, HO, WO), lambda g: (g, 0, 0)),     # x plane, native dtype
            ],
            out_specs=pl.BlockSpec((1, 1, 1), lambda g: (g, 0, 0)),  # per-plane partial L1 sum
            scratch_shapes=[pltpu.VMEM((2, HO + PH, W), jnp.float32)],
        ),
        compiler_params=pltpu.CompilerParams(
            dimension_semantics=("parallel",),       # independent planes -> v7x megacore-friendly
            vmem_limit_bytes=48 * 1024 * 1024,
        ),
    )(B, y2, x2)

    return jnp.sum(partial) / (N * C * HO * WO)


def _reference_loss(x, y, k):
    """Pure-JAX reference with the module's semantics (zero-padded same conv, stride 2)."""
    N, C, H, W = y.shape
    KH, KW = k.shape
    PH, PW = KH // 2, KW // 2
    HO, WO = H // 2, W // 2
    y_pad = jnp.pad(y.astype(jnp.float32), ((0, 0), (0, 0), (PH, PH), (PW, PW)))
    acc = jnp.zeros((N, C, HO, WO), jnp.float32)
    for dh in range(KH):
        for dw in range(KW):
            acc = acc + k[dh, dw] * y_pad[:, :, dh:dh + H:2, dw:dw + W:2]
    x_hat = 127.5 * (acc + 1.0)
    # x_hat.round() result is discarded in the PyTorch module -> no-op
    x_hat = x_hat / 127.5 - 1.0
    return jnp.mean(jnp.abs(x.astype(jnp.float32) - x_hat))


if __name__ == "__main__":
    key = jax.random.PRNGKey(0)
    kx, ky = jax.random.split(key)

    N, C, H, W = 2, 4, 16, 16
    y = jax.random.uniform(ky, (N, C, H, W), jnp.float32, -1.0, 1.0)
    x = jax.random.uniform(kx, (N, C, H // 2, W // 2), jnp.float32, -1.0, 1.0)

    # Deterministic 5x5 Gaussian blur kernel (the "k" argument of forward()).
    coords = jnp.arange(5, dtype=jnp.float32) - 2.0
    g = jnp.exp(-(coords ** 2) / 2.0)
    k2d = jnp.outer(g, g)
    k2d = k2d / jnp.sum(k2d)

    loss = jax.block_until_ready(downsample_loss(x, y, k2d))
    ref = jax.block_until_ready(_reference_loss(x, y, k2d))
    assert abs(float(loss) - float(ref)) < 1e-5, (float(loss), float(ref))

    print("KERNEL_OK")
</pallas_src>

<mosaic_0001>
module attributes {stable_mosaic.version = 11 : i64} {
  func.func @kernel(%arg0: i32, %arg1: memref<5x16x8xf32, #tpu.memory_space<vmem>>, %arg2: memref<1x8x32xf32, #tpu.memory_space<vmem>>, %arg3: memref<1x8x8xf32, #tpu.memory_space<vmem>>, %arg4: memref<1x1x1xf32, #tpu.memory_space<vmem>>, %arg5: memref<2x10x16xf32, #tpu.memory_space<vmem>>) attributes {dimension_semantics = [#tpu.dimension_semantics<parallel>], iteration_bounds = array<i64: 8>, scalar_prefetch = 0 : i64, scratch_operands = 1 : i64, tpu.core_type = #tpu.core_type<tc>, window_params = [{pipeline_mode = #tpu.pipeline_mode<synchronous>, transform_indices = @transform_0, window_bounds = array<i64: 5, 16, 8>}, {transform_indices = @transform_1, window_bounds = array<i64: 1, 8, 32>}, {transform_indices = @transform_2, window_bounds = array<i64: 1, 8, 8>}, {transform_indices = @transform_3, window_bounds = array<i64: 1, 1, 1>}]} {
    %cst = arith.constant 0.000000e+00 : f32
    %0 = vector.broadcast %cst : f32 to vector<1x16xf32>
    %c0 = arith.constant 0 : index
    %c0_0 = arith.constant 0 : index
    %c0_1 = arith.constant 0 : index
    %1 = vector.load %arg5[%c0, %c0_0, %c0_1] : memref<2x10x16xf32, #tpu.memory_space<vmem>>, vector<1x1x16xf32>
    %2 = vector.shape_cast %1 : vector<1x1x16xf32> to vector<1x16xf32>
    %3 = vector.shape_cast %0 : vector<1x16xf32> to vector<1x1x16xf32>
    tpu.vector_store %arg5[%c0, %c0_0, %c0_1], %3 {strides = array<i32>} : memref<2x10x16xf32, #tpu.memory_space<vmem>>, vector<1x1x16xf32>,
    %cst_2 = arith.constant 0.000000e+00 : f32
    %4 = vector.broadcast %cst_2 : f32 to vector<1x16xf32>
    %c1 = arith.constant 1 : index
    %c0_3 = arith.constant 0 : index
    %c0_4 = arith.constant 0 : index
    %5 = vector.load %arg5[%c1, %c0_3, %c0_4] : memref<2x10x16xf32, #tpu.memory_space<vmem>>, vector<1x1x16xf32>
    %6 = vector.shape_cast %5 : vector<1x1x16xf32> to vector<1x16xf32>
    %7 = vector.shape_cast %4 : vector<1x16xf32> to vector<1x1x16xf32>
    tpu.vector_store %arg5[%c1, %c0_3, %c0_4], %7 {strides = array<i32>} : memref<2x10x16xf32, #tpu.memory_space<vmem>>, vector<1x1x16xf32>,
    %cst_5 = arith.constant 0.000000e+00 : f32
    %8 = vector.broadcast %cst_5 : f32 to vector<1x16xf32>
    %c0_6 = arith.constant 0 : index
    %c9 = arith.constant 9 : index
    %c0_7 = arith.constant 0 : index
    %9 = vector.load %arg5[%c0_6, %c9, %c0_7] : memref<2x10x16xf32, #tpu.memory_space<vmem>>, vector<1x1x16xf32>
    %10 = vector.shape_cast %9 : vector<1x1x16xf32> to vector<1x16xf32>
    %11 = vector.shape_cast %8 : vector<1x16xf32> to vector<1x1x16xf32>
    tpu.vector_store %arg5[%c0_6, %c9, %c0_7], %11 {strides = array<i32>} : memref<2x10x16xf32, #tpu.memory_space<vmem>>, vector<1x1x16xf32>,
    %cst_8 = arith.constant 0.000000e+00 : f32
    %12 = vector.broadcast %cst_8 : f32 to vector<1x16xf32>
    %c1_9 = arith.constant 1 : index
    %c9_10 = arith.constant 9 : index
    %c0_11 = arith.constant 0 : index
    %13 = vector.load %arg5[%c1_9, %c9_10, %c0_11] : memref<2x10x16xf32, #tpu.memory_space<vmem>>, vector<1x1x16xf32>
    %14 = vector.shape_cast %13 : vector<1x1x16xf32> to vector<1x16xf32>
    %15 = vector.shape_cast %12 : vector<1x16xf32> to vector<1x1x16xf32>
    tpu.vector_store %arg5[%c1_9, %c9_10, %c0_11], %15 {strides = array<i32>} : memref<2x10x16xf32, #tpu.memory_space<vmem>>, vector<1x1x16xf32>,
    %c0_12 = arith.constant 0 : index
    %c0_13 = arith.constant 0 : index
    %c0_14 = arith.constant 0 : index
    %16 = vector.load %arg2[%c0_12, %c0_13, %c0_14] : memref<1x8x32xf32, #tpu.memory_space<vmem>>, vector<1x8x16xf32>
    %17 = vector.shape_cast %16 : vector<1x8x16xf32> to vector<8x16xf32>
    %c0_15 = arith.constant 0 : index
    %c1_16 = arith.constant 1 : index
    %c0_17 = arith.constant 0 : index
    %18 = vector.load %arg5[%c0_15, %c1_16, %c0_17] : memref<2x10x16xf32, #tpu.memory_space<vmem>>, vector<1x8x16xf32>
    %19 = vector.shape_cast %18 : vector<1x8x16xf32> to vector<8x16xf32>
    %20 = vector.shape_cast %17 : vector<8x16xf32> to vector<1x8x16xf32>
    tpu.vector_store %arg5[%c0_15, %c1_16, %c0_17], %20 {strides = array<i32>} : memref<2x10x16xf32, #tpu.memory_space<vmem>>, vector<1x8x16xf32>,
    %c0_18 = arith.constant 0 : index
    %c0_19 = arith.constant 0 : index
    %c16 = arith.constant 16 : index
    %21 = vector.load %arg2[%c0_18, %c0_19, %c16] : memref<1x8x32xf32, #tpu.memory_space<vmem>>, vector<1x8x16xf32>
    %22 = vector.shape_cast %21 : vector<1x8x16xf32> to vector<8x16xf32>
    %c1_20 = arith.constant 1 : index
    %c1_21 = arith.constant 1 : index
    %c0_22 = arith.constant 0 : index
    %23 = vector.load %arg5[%c1_20, %c1_21, %c0_22] : memref<2x10x16xf32, #tpu.memory_space<vmem>>, vector<1x8x16xf32>
    %24 = vector.shape_cast %23 : vector<1x8x16xf32> to vector<8x16xf32>
    %25 = vector.shape_cast %22 : vector<8x16xf32> to vector<1x8x16xf32>
    tpu.vector_store %arg5[%c1_20, %c1_21, %c0_22], %25 {strides = array<i32>} : memref<2x10x16xf32, #tpu.memory_space<vmem>>, vector<1x8x16xf32>,
    %cst_23 = arith.constant 0.000000e+00 : f32
    %26 = vector.broadcast %cst_23 : f32 to vector<8x8xf32>
    %cst_24 = arith.constant 0.000000e+00 : f32
    %27 = vector.broadcast %cst_24 : f32 to vector<8x8xf32>
    %c0_25 = arith.constant 0 : index
    %c0_26 = arith.constant 0 : index
    %c0_27 = arith.constant 0 : index
    %28 = vector.load %arg5[%c0_25, %c0_26, %c0_27] : memref<2x10x16xf32, #tpu.memory_space<vmem>>, vector<1x8x16xf32>
    %29 = vector.shape_cast %28 : vector<1x8x16xf32> to vector<8x16xf32>
    %c0_28 = arith.constant 0 : index
    %c0_29 = arith.constant 0 : index
    %c0_30 = arith.constant 0 : index
    %30 = vector.load %arg1[%c0_28, %c0_29, %c0_30] : memref<5x16x8xf32, #tpu.memory_space<vmem>>, vector<1x16x8xf32>
    %31 = vector.shape_cast %30 : vector<1x16x8xf32> to vector<16x8xf32>
    %cst_31 = arith.constant dense<0.000000e+00> : vector<8x8xf32>
    %32 = tpu.matmul %29, %31, %cst_31 {dimension_numbers = #tpu.dot_dimension_numbers<[1], [0], [0], [1], [0, 0, 1, 1], [], []>} : vector<8x16xf32>, vector<16x8xf32>, vector<8x8xf32> -> vector<8x8xf32>
    %33 = arith.addf %26, %32 : vector<8x8xf32>
    %c1_32 = arith.constant 1 : index
    %c0_33 = arith.constant 0 : index
    %c0_34 = arith.constant 0 : index
    %34 = vector.load %arg5[%c1_32, %c0_33, %c0_34] : memref<2x10x16xf32, #tpu.memory_space<vmem>>, vector<1x8x16xf32>
    %35 = vector.shape_cast %34 : vector<1x8x16xf32> to vector<8x16xf32>
    %c1_35 = arith.constant 1 : index
    %c0_36 = arith.constant 0 : index
    %c0_37 = arith.constant 0 : index
    %36 = vector.load %arg1[%c1_35, %c0_36, %c0_37] : memref<5x16x8xf32, #tpu.memory_space<vmem>>, vector<1x16x8xf32>
    %37 = vector.shape_cast %36 : vector<1x16x8xf32> to vector<16x8xf32>
    %cst_38 = arith.constant dense<0.000000e+00> : vector<8x8xf32>
    %38 = tpu.matmul %35, %37, %cst_38 {dimension_numbers = #tpu.dot_dimension_numbers<[1], [0], [0], [1], [0, 0, 1, 1], [], []>} : vector<8x16xf32>, vector<16x8xf32>, vector<8x8xf32> -> vector<8x8xf32>
    %39 = arith.addf %27, %38 : vector<8x8xf32>
    %c0_39 = arith.constant 0 : index
    %c1_40 = arith.constant 1 : index
    %c0_41 = arith.constant 0 : index
    %40 = vector.load %arg5[%c0_39, %c1_40, %c0_41] : memref<2x10x16xf32, #tpu.memory_space<vmem>>, vector<1x8x16xf32>
    %41 = vector.shape_cast %40 : vector<1x8x16xf32> to vector<8x16xf32>
    %c2 = arith.constant 2 : index
    %c0_42 = arith.constant 0 : index
    %c0_43 = arith.constant 0 : index
    %42 = vector.load %arg1[%c2, %c0_42, %c0_43] : memref<5x16x8xf32, #tpu.memory_space<vmem>>, vector<1x16x8xf32>
    %43 = vector.shape_cast %42 : vector<1x16x8xf32> to vector<16x8xf32>
    %cst_44 = arith.constant dense<0.000000e+00> : vector<8x8xf32>
    %44 = tpu.matmul %41, %43, %cst_44 {dimension_numbers = #tpu.dot_dimension_numbers<[1], [0], [0], [1], [0, 0, 1, 1], [], []>} : vector<8x16xf32>, vector<16x8xf32>, vector<8x8xf32> -> vector<8x8xf32>
    %45 = arith.addf %33, %44 : vector<8x8xf32>
    %c1_45 = arith.constant 1 : index
    %c1_46 = arith.constant 1 : index
    %c0_47 = arith.constant 0 : index
    %46 = vector.load %arg5[%c1_45, %c1_46, %c0_47] : memref<2x10x16xf32, #tpu.memory_space<vmem>>, vector<1x8x16xf32>
    %47 = vector.shape_cast %46 : vector<1x8x16xf32> to vector<8x16xf32>
    %c3 = arith.constant 3 : index
    %c0_48 = arith.constant 0 : index
    %c0_49 = arith.constant 0 : index
    %48 = vector.load %arg1[%c3, %c0_48, %c0_49] : memref<5x16x8xf32, #tpu.memory_space<vmem>>, vector<1x16x8xf32>
    %49 = vector.shape_cast %48 : vector<1x16x8xf32> to vector<16x8xf32>
    %cst_50 = arith.constant dense<0.000000e+00> : vector<8x8xf32>
    %50 = tpu.matmul %47, %49, %cst_50 {dimension_numbers = #tpu.dot_dimension_numbers<[1], [0], [0], [1], [0, 0, 1, 1], [], []>} : vector<8x16xf32>, vector<16x8xf32>, vector<8x8xf32> -> vector<8x8xf32>
    %51 = arith.addf %39, %50 : vector<8x8xf32>
    %c0_51 = arith.constant 0 : index
    %c2_52 = arith.constant 2 : index
    %c0_53 = arith.constant 0 : index
    %52 = vector.load %arg5[%c0_51, %c2_52, %c0_53] : memref<2x10x16xf32, #tpu.memory_space<vmem>>, vector<1x8x16xf32>
    %53 = vector.shape_cast %52 : vector<1x8x16xf32> to vector<8x16xf32>
    %c4 = arith.constant 4 : index
    %c0_54 = arith.constant 0 : index
    %c0_55 = arith.constant 0 : index
    %54 = vector.load %arg1[%c4, %c0_54, %c0_55] : memref<5x16x8xf32, #tpu.memory_space<vmem>>, vector<1x16x8xf32>
    %55 = vector.shape_cast %54 : vector<1x16x8xf32> to vector<16x8xf32>
    %cst_56 = arith.constant dense<0.000000e+00> : vector<8x8xf32>
    %56 = tpu.matmul %53, %55, %cst_56 {dimension_numbers = #tpu.dot_dimension_numbers<[1], [0], [0], [1], [0, 0, 1, 1], [], []>} : vector<8x16xf32>, vector<16x8xf32>, vector<8x8xf32> -> vector<8x8xf32>
    %57 = arith.addf %45, %56 : vector<8x8xf32>
    %58 = arith.addf %57, %51 : vector<8x8xf32>
    %c0_57 = arith.constant 0 : index
    %c0_58 = arith.constant 0 : index
    %c0_59 = arith.constant 0 : index
    %59 = vector.load %arg3[%c0_57, %c0_58, %c0_59] : memref<1x8x8xf32, #tpu.memory_space<vmem>>, vector<1x8x8xf32>
    %60 = vector.shape_cast %59 : vector<1x8x8xf32> to vector<8x8xf32>
    %61 = arith.subf %60, %58 : vector<8x8xf32>
    %62 = math.absf %61 : vector<8x8xf32>
    %63 = vector.shape_cast %62 : vector<8x8xf32> to vector<1x8x8xf32>
    %cst_60 = arith.constant dense<0.000000e+00> : vector<1xf32>
    %64 = vector.multi_reduction <add>, %63, %cst_60 [1, 2] : vector<1x8x8xf32> to vector<1xf32>
    %65 = vector.shape_cast %64 : vector<1xf32> to vector<1x1x1xf32>
    %66 = vector.extract %65[0, 0, 0] : f32 from vector<1x1x1xf32>
    %67 = vector.broadcast %66 : f32 to vector<1x1x1xf32>
    %c0_61 = arith.constant 0 : index
    %c0_62 = arith.constant 0 : index
    %c0_63 = arith.constant 0 : index
    %68 = vector.load %arg4[%c0_61, %c0_62, %c0_63] : memref<1x1x1xf32, #tpu.memory_space<vmem>>, vector<1x1x1xf32>
    tpu.vector_store %arg4[%c0_61, %c0_62, %c0_63], %67 {strides = array<i32>} : memref<1x1x1xf32, #tpu.memory_space<vmem>>, vector<1x1x1xf32>,
    return
  }
  func.func @transform_0(%arg0: i32) -> (i32, i32, i32) {
    %c0_i32 = arith.constant 0 : i32
    %c0_i32_0 = arith.constant 0 : i32
    %c0_i32_1 = arith.constant 0 : i32
    %c0_i32_2 = arith.constant 0 : i32
    return %c0_i32, %c0_i32_0, %c0_i32_1 : i32, i32, i32
  }
  func.func @transform_1(%arg0: i32) -> (i32, i32, i32) {
    %c0_i32 = arith.constant 0 : i32
    %c0_i32_0 = arith.constant 0 : i32
    %c0_i32_1 = arith.constant 0 : i32
    return %arg0, %c0_i32, %c0_i32_0 : i32, i32, i32
  }
  func.func @transform_2(%arg0: i32) -> (i32, i32, i32) {
    %c0_i32 = arith.constant 0 : i32
    %c0_i32_0 = arith.constant 0 : i32
    %c0_i32_1 = arith.constant 0 : i32
    return %arg0, %c0_i32, %c0_i32_0 : i32, i32, i32
  }
  func.func @transform_3(%arg0: i32) -> (i32, i32, i32) {
    %c0_i32 = arith.constant 0 : i32
    %c0_i32_0 = arith.constant 0 : i32
    %c0_i32_1 = arith.constant 0 : i32
    return %arg0, %c0_i32, %c0_i32_0 : i32, i32, i32
  }
}

</mosaic_0001>

<bundles_post_ra>
// kernel: downsample_loss.1
= control target key start
LH: loop header
LB: loop body
LE: loop exit
PB: predicated region body
PF: predicated region fallthrough
CT: control target
= control target key end

     0   :  { %s798_s12 = smov 0   ;;  %s868_s0 = inlined_call_operand.vmem [shape: f32[5,16,8], index: 0, kind: input, shape index: {}]   ;;  %s869_s1 = inlined_call_operand.vmem [shape: f32[8,8,32], index: 1, kind: input, shape index: {}]   ;;  %s870_s2 = inlined_call_operand.vmem [shape: f32[8,8,8], index: 2, kind: input, shape index: {}]   ;;  %s871_s3 = inlined_call_operand.vmem [shape: f32[8,1,1], index: 3, kind: output, shape index: {}]  }
   0x1 LB: > { %s658_s13 = sadd.s32 4294967295, %s772_s12   ;;  %p662_p0 = scmp.ge.s32.totalorder %s772_s12, 1  ;;  %s772_s12 = sphi %s798_s12, %s13_s12  }
   0x2   : > { %p145_p1 = scmp.lt.s32.totalorder %s772_s12, 9 }
   0x4   : > { %p146_p2 = pnand %p662_p0, %p145_p1 }
   0x5   : > { %p170_p3 = scmp.lt.s32.totalorder (!%p146_p2), %s658_s13, 7  ;;  %v667_v0 = vld [vmem:[%s868_s0 + $0x20] sm:$0xff] (!%p146_p2)  ;;  %v668_v1 = vld [vmem:[%s868_s0 + $0x28] sm:$0xff] (!%p146_p2)  ;;  %v774_v2 = vmov (!%p146_p2), 0.0|0.0   ;;  %v671_v4 = vld [vmem:[%s868_s0 + $0x30] sm:$0xff] (!%p146_p2)  ;;  %vm181_vm0 = vcmask (!%p146_p2), 122880  }
   0x6   : > { %149 = sbr.rel (%p146_p2) target bundleno = 581 (0x245), region = 32  ;;  %730 = vmatprep.subr.bf16.mxu1 (!%p146_p2), %v774_v2  ;;  %736 = vmatprep.subr.bf16.mxu0 (!%p146_p2), %v774_v2  ;;  %v731_v3 = vpack.c.bf16 (!%p146_p2), %v668_v1, %v667_v0  ;;  %v672_v5 = vld [vmem:[%s868_s0 + $0x38] sm:$0xff] (!%p146_p2)  ;;  %vm775_vm1 = vmmov (!%p146_p2), 0   ;;  %v776_v7 = vmov (!%p146_p2), 0.0   ;;  %vm188_vm2 = vcmask (!%p146_p2), 130048   ;;  %s777_s26 = smov (!%p146_p2), 112  }
   0x7   : > { %v737_v6 = vpack.c.bf16 (!%p146_p2), %v672_v5, %v671_v4  ;;  %699 = vmatprep.mubr.msk.f32.mxu1 (!%p146_p2), %vm775_vm1, %v776_v7  ;;  %182 = vst.msk [vmem:[#allocation2] sm:$0x1] (!%p146_p2), %vm181_vm0, %v776_v7  ;;  %184 = vst.msk [vmem:[#allocation2 + $0x10] sm:$0x1] (!%p146_p2), %vm181_vm0, %v776_v7  ;;  %713 = vmatprep.mubr.msk.f32.mxu0 (!%p146_p2), %vm775_vm1, %v776_v7  ;;  %v197_v9 = vld [vmem:[%s868_s0] sm:$0xff] (!%p146_p2)  ;;  %v198_v10 = vld [vmem:[%s868_s0 + $0x8] sm:$0xff] (!%p146_p2) }
   0x8   : > { %185 = vst.msk [vmem:[#allocation2 + $0x9] sm:$0x1] (!%p146_p2), %vm181_vm0, %v776_v7  ;;  %732 = vmatpush3.bf16.msra.mxu1 (!%p146_p2), %v731_v3  ;;  %v734_v11 = vpack.c.bf16 (!%p146_p2), %v198_v10, %v197_v9  ;;  %v665_v15 = vld [vmem:[%s868_s0 + $0x10] sm:$0xff] (!%p146_p2)  ;;  %v666_v16 = vld [vmem:[%s868_s0 + $0x18] sm:$0xff] (!%p146_p2)  ;;  %v675_v19 = vld [vmem:[%s868_s0 + $0x40] sm:$0xff] (!%p146_p2)  ;;  %vm585_vm3 = vcmask (!%p146_p2), 64512  }
   0x9   : > { %738 = vmatpush3.bf16.msra.mxu0 (!%p146_p2), %v737_v6  ;;  %733 = vmatprep.subr.bf16.mxu1 (!%p146_p2), %v774_v2  ;;  %v740_v17 = vpack.c.bf16 (!%p146_p2), %v666_v16, %v665_v15  ;;  %v676_v20 = vld [vmem:[%s868_s0 + $0x48] sm:$0xff] (!%p146_p2)  ;;  %vm597_vm4 = vcmask (!%p146_p2), 0  }
   0xa   : > { %739 = vmatprep.subr.bf16.mxu0 (!%p146_p2), %v774_v2  ;;  %v743_v21 = vpack.c.bf16 (!%p146_p2), %v676_v20, %v675_v19 }
   0xd   : > { %s873_s13 = smov (!%p170_p3, %s658_s13), 7 }
   0xe   : > { %s663_s22 = sshll.u32 %s873_s13, 3  ;;  %s180_s19 = scalar_lea.vmem %s871_s3, %s873_s13 }
   0xf   : > { %s173_s25 = scalar_lea.vmem %s869_s1, %s663_s22  ;;  %s177_s16 = scalar_lea.vmem %s870_s2, %s663_s22 }
  0x10   : > { %v190_v8 = vld [vmem:[%s173_s25] sm:$0xff] }
  0x11   : > { %192 = vrot.lane.b32.xlu0 %v190_v8, %s777_s26  ;;  %189 = vst.msk [vmem:[#allocation2 + $0x1] sm:$0xff] %vm188_vm2, %v190_v8  ;;  %v582_v27 = vld [vmem:[%s177_s16] sm:$0xff] }
  0x18   : > { %v203_v12 = vld [vmem:[#allocation2 + $0x1] sm:$0xff] }
  0x19   : > { %700 = vmatmul.mubr.msk.f32.vlgmr.msra.gmra.mrb[0].mxu1 %vm188_vm2, %v203_v12  ;;  %v196_v13 = vld [vmem:[#allocation2] sm:$0xff] }
  0x1a   : > { %735 = vmatpush3.bf16.msra.mxu1 %v734_v11  ;;  %706 = vmatprep.mubr.msk.f32.mxu1 %vm775_vm1, %v776_v7  ;;  %v503_v23 = vld [vmem:[#allocation2 + $0x2] sm:$0xff] }
  0x21   : > { %707 = vmatmul.mubr.msk.f32.vlgmr.msra.gmra.mrb[0].mxu1 %vm188_vm2, %v196_v13 }
  0x83   : > { %v193_v14 = vpop.permute.xlu0 %192 }
  0x84   : > { %195 = vst.msk [vmem:[#allocation2 + $0x11] sm:$0xff] %vm188_vm2, %v193_v14 }
  0x8b   : > { %v353_v18 = vld [vmem:[#allocation2 + $0x11] sm:$0xff] }
  0x8c   : > { %714 = vmatmul.mubr.msk.f32.vlgmr.msra.gmra.mrb[0].mxu0 %vm188_vm2, %v353_v18  ;;  %v199_v22 = vld [vmem:[#allocation2 + $0x10] sm:$0xff] }
  0x8d   : > { %741 = vmatpush3.bf16.msra.mxu0 %v740_v17  ;;  %720 = vmatprep.mubr.msk.f32.mxu0 %vm775_vm1, %v776_v7 }
  0x8e   : > { %742 = vmatprep.subr.bf16.mxu0 %v774_v2 }
  0x94   : > { %721 = vmatmul.mubr.msk.f32.vlgmr.msra.gmra.mrb[0].mxu0 %vm188_vm2, %v199_v22 }
  0x95   : > { %744 = vmatpush3.bf16.msra.mxu0 %v743_v21  ;;  %727 = vmatprep.mubr.msk.f32.mxu0 %vm775_vm1, %v776_v7 }
  0x9c   : > { %728 = vmatmul.mubr.msk.f32.vlgmr.msra.gmra.mrb[0].mxu0 %vm188_vm2, %v503_v23 }
  0xf4   : > { %v349_v24 = vpop.f32.mrb[0].mxu1 }
  0xf5   : > { %v708_v25 = vpop.f32.mrb[1].mxu1 }
 0x16f   : > { %v576_v26 = vpop.f32.mrb[0].mxu0 }
 0x170   : > { %v745_v28 = vadd.f32 %v576_v26, %v349_v24  ;;  %v729_v29 = vpop.f32.mrb[1].mxu0 }
 0x172   : > { %v583_v30 = vsub.f32 %v582_v27, %v745_v28 }
 0x174   : > { %v584_v31 = vand.u32 2147483647, %v583_v30 }
 0x176   : > { %v586_v32 = vsel %vm585_vm3, %v584_v31, 0.0 }
 0x177   : > { %587 = vadd.xlane.f32.xlu0 %v586_v32 }
 0x204   : > { %v588_v33 = vpop.xlane.xlu0 %587 }
 0x205   : > { %v589_v34 = vrot.slane %v588_v33, 4 }
 0x207   : > { %v590_v35 = vadd.f32 %v589_v34, %v588_v33 }
 0x209   : > { %v591_v36 = vrot.slane %v590_v35, 2 }
 0x20b   : > { %v592_v37 = vadd.f32 %v591_v36, %v590_v35 }
 0x20d   : > { %v593_v38 = vrot.slane %v592_v37, 1 }
 0x20f   : > { %v594_v39 = vadd.f32 %v593_v38, %v592_v37 }
 0x211   : > { %752 = vpush %v594_v39 }
 0x242   : > { %s753_s20 = spop %752 }
 0x243   : > { %v596_v40 = vstv %s753_s20 }
 0x244   : > { %598 = vst.msk [vmem:[%s180_s19] sm:$0x1] %vm597_vm4, %v596_v40 }
 0x245 PF: > { %s13_s12 = sadd.s32 1, %s772_s12  }
 0x246   : > { %p10_p4 = scmp.ge.s32.totalorder %s13_s12, 10  }
 0x248   :  { %12 = sbr.rel (!%p10_p4) target bundleno = 1 (0x1), region = 70 }

</bundles_post_ra>
